<compile_context>
chip_gen: v5e
topology: v5e:2x2
jax: 0.10.0
libtpu: 0.0.40
codegen_flags: <defaults>
</compile_context>

<pallas_src>
import math

import jax
import jax.numpy as jnp
from jax.experimental import pallas as pl
from jax.experimental.pallas import tpu as pltpu


def dqn_kernel(x_ref,
               w1_ref, b1_ref,
               w2_ref, b2_ref,
               w3_ref, b3_ref,
               w4_ref, b4_ref,
               o_ref):
    cdt = w1_ref.dtype  # bf16 compute dtype for MXU inputs

    # ---- Layer 1: Linear(4 -> 8 padded, 256) + ReLU ------------------------
    # K is tiny, but the MXU is idle during this phase; one bf16 pass beats
    # four cross-lane broadcast FMAs on the VPU/XLU serial dependency chain.
    # Dropout(0.2) -> identity in eval mode.
    h = jnp.dot(x_ref[...].astype(cdt), w1_ref[...],
                preferred_element_type=jnp.float32)
    h = jnp.maximum(h + b1_ref[...], 0.0)

    # ---- Layer 2: Linear(256, 128) + ReLU (Dropout -> identity) ------------
    h = jnp.dot(h.astype(cdt), w2_ref[...],
                preferred_element_type=jnp.float32)
    h = jnp.maximum(h + b2_ref[...], 0.0)

    # ---- Layer 3: Linear(128, 64 -> padded to 128) + ReLU ------------------
    h = jnp.dot(h.astype(cdt), w3_ref[...],
                preferred_element_type=jnp.float32)
    h = jnp.maximum(h + b3_ref[...], 0.0)

    # ---- Layer 4: Linear(64 -> 128 padded, 2 -> 8 padded) ------------------
    # 8-lane output block: masked store, but 16x less HBM write traffic than
    # a 128-wide padded output tile.
    h = jnp.dot(h.astype(cdt), w4_ref[...],
                preferred_element_type=jnp.float32)
    o_ref[...] = (h + b4_ref[...]).astype(o_ref.dtype)


def pad_and_cast_params(params, in_pad=8, hidden_pad=128, out_pad=8,
                        compute_dtype=jnp.bfloat16):
    """Zero-pad input dim 4->8, hidden 64->128 and output 2->8; cast the MXU
    weights to bf16.  Biases stay f32 (VPU epilogue stays f32 for v5e)."""
    in_dim = params["w1"].shape[0]
    h3 = params["w3"].shape[1]
    out = params["w4"].shape[1]
    w1 = jnp.pad(params["w1"], ((0, in_pad - in_dim), (0, 0)))
    w3 = jnp.pad(params["w3"], ((0, 0), (0, hidden_pad - h3)))
    b3 = jnp.pad(params["b3"], ((0, 0), (0, hidden_pad - h3)))
    w4 = jnp.pad(params["w4"], ((0, hidden_pad - h3), (0, out_pad - out)))
    b4 = jnp.pad(params["b4"], ((0, 0), (0, out_pad - out)))
    return {
        "w1": w1.astype(compute_dtype),
        "b1": params["b1"].astype(jnp.float32),
        "w2": params["w2"].astype(compute_dtype),
        "b2": params["b2"].astype(jnp.float32),
        "w3": w3.astype(compute_dtype),
        "b3": b3.astype(jnp.float32),
        "w4": w4.astype(compute_dtype),
        "b4": b4.astype(jnp.float32),
    }


def _round_up(x, m):
    return (x + m - 1) // m * m


def choose_tm(batch):
    """Adaptive batch-tile size."""
    if batch <= 64:
        # One small tile rounded to the 8-sublane minimum; avoids computing
        # and writing 16x dead rows for tiny inference batches.
        return _round_up(max(batch, 1), 8)
    # Large batches: big tiles (up to 512 rows) amortize per-step overhead,
    # but cap so the "parallel" grid axis has >= 2 iterations (v7x has two
    # TensorCores; ~neutral on single-TC v5e/v6e).
    tm = 512
    while tm > 128 and _round_up(batch, 128) < 2 * tm:
        tm //= 2
    return tm


def dqn_forward(x, pparams, out_dim=2, tm=None):
    """x: (B, input_dim) f32.  pparams: output of pad_and_cast_params."""
    B, in_dim = x.shape
    in_pad = pparams["w1"].shape[0]
    if in_pad != in_dim:
        x = jnp.pad(x, ((0, 0), (0, in_pad - in_dim)))

    if tm is None:
        tm = choose_tm(B)
    b_pad = _round_up(B, tm)
    if b_pad != B:
        x = jnp.pad(x, ((0, b_pad - B), (0, 0)))

    h1 = pparams["w1"].shape[1]
    h2 = pparams["w2"].shape[1]
    h3 = pparams["w3"].shape[1]
    op = pparams["w4"].shape[1]

    resident = lambda i: (0, 0)   # weights/biases: same block every grid step

    out = pl.pallas_call(
        dqn_kernel,
        out_shape=jax.ShapeDtypeStruct((b_pad, op), jnp.float32),
        grid=(b_pad // tm,),
        in_specs=[
            pl.BlockSpec((tm, in_pad), lambda i: (i, 0)),    # x (streamed)
            pl.BlockSpec((in_pad, h1), resident),            # w1 (padded K)
            pl.BlockSpec((1, h1), resident),                 # b1
            pl.BlockSpec((h1, h2), resident),                # w2
            pl.BlockSpec((1, h2), resident),                 # b2
            pl.BlockSpec((h2, h3), resident),                # w3 (padded)
            pl.BlockSpec((1, h3), resident),                 # b3 (padded)
            pl.BlockSpec((h3, op), resident),                # w4 (padded)
            pl.BlockSpec((1, op), resident),                 # b4 (padded)
        ],
        out_specs=pl.BlockSpec((tm, op), lambda i: (i, 0)),
        compiler_params=pltpu.CompilerParams(
            dimension_semantics=("parallel",)),
    )(x,
      pparams["w1"], pparams["b1"],
      pparams["w2"], pparams["b2"],
      pparams["w3"], pparams["b3"],
      pparams["w4"], pparams["b4"])

    return out[:B, :out_dim]


def init_params(key, input_dim=4, output_dim=2):
    """PyTorch-style (Kaiming-uniform) init: U(-1/sqrt(fan_in), 1/sqrt(fan_in))."""
    dims = [(input_dim, 256), (256, 128), (128, 64), (64, output_dim)]
    params = {}
    for i, (fan_in, fan_out) in enumerate(dims, start=1):
        key, kw, kb = jax.random.split(key, 3)
        bound = 1.0 / math.sqrt(fan_in)
        params[f"w{i}"] = jax.random.uniform(
            kw, (fan_in, fan_out), jnp.float32, minval=-bound, maxval=bound)
        params[f"b{i}"] = jax.random.uniform(
            kb, (1, fan_out), jnp.float32, minval=-bound, maxval=bound)
    return params


def dqn_reference(x, params):
    """Pure-f32 reference matching the PyTorch module in eval mode."""
    h = jnp.maximum(x @ params["w1"] + params["b1"], 0.0)
    h = jnp.maximum(h @ params["w2"] + params["b2"], 0.0)
    h = jnp.maximum(h @ params["w3"] + params["b3"], 0.0)
    return h @ params["w4"] + params["b4"]


if __name__ == "__main__":
    key = jax.random.PRNGKey(0)
    key, kx, kx2 = jax.random.split(key, 3)

    B, input_dim, output_dim = 8, 4, 2
    params = init_params(key, input_dim=input_dim, output_dim=output_dim)
    pparams = pad_and_cast_params(params)

    # Small inference batch: single 8-row tile, grid=(1,).
    x = jax.random.normal(kx, (B, input_dim), jnp.float32)
    out = dqn_forward(x, pparams, out_dim=output_dim)
    out = jax.block_until_ready(out)
    ref = dqn_reference(x, params)
    assert out.shape == (B, output_dim), out.shape
    # bf16 MXU inputs with f32 accumulation -> compare loosely vs f32 ref.
    assert jnp.allclose(out, ref, atol=5e-2, rtol=5e-2), \
        f"max abs err = {jnp.max(jnp.abs(out - ref))}"

    # Larger batch: exercises the multi-step adaptive-tile path.
    B2 = 300
    x2 = jax.random.normal(kx2, (B2, input_dim), jnp.float32)
    out2 = jax.block_until_ready(dqn_forward(x2, pparams, out_dim=output_dim))
    ref2 = dqn_reference(x2, params)
    assert out2.shape == (B2, output_dim), out2.shape
    assert jnp.allclose(out2, ref2, atol=5e-2, rtol=5e-2), \
        f"max abs err = {jnp.max(jnp.abs(out2 - ref2))}"

    print("KERNEL_OK")
</pallas_src>

<mosaic_0001>
module attributes {stable_mosaic.version = 11 : i64} {
  func.func @dqn_kernel(%arg0: i32, %arg1: memref<8x8xf32, #tpu.memory_space<vmem>>, %arg2: memref<8x256xbf16, #tpu.memory_space<vmem>>, %arg3: memref<1x256xf32, #tpu.memory_space<vmem>>, %arg4: memref<256x128xbf16, #tpu.memory_space<vmem>>, %arg5: memref<1x128xf32, #tpu.memory_space<vmem>>, %arg6: memref<128x128xbf16, #tpu.memory_space<vmem>>, %arg7: memref<1x128xf32, #tpu.memory_space<vmem>>, %arg8: memref<128x8xbf16, #tpu.memory_space<vmem>>, %arg9: memref<1x8xf32, #tpu.memory_space<vmem>>, %arg10: memref<8x8xf32, #tpu.memory_space<vmem>>) attributes {dimension_semantics = [#tpu.dimension_semantics<parallel>], iteration_bounds = array<i64: 1>, scalar_prefetch = 0 : i64, scratch_operands = 0 : i64, tpu.core_type = #tpu.core_type<tc>, window_params = [{transform_indices = @transform_0, window_bounds = array<i64: 8, 8>}, {pipeline_mode = #tpu.pipeline_mode<synchronous>, transform_indices = @transform_1, window_bounds = array<i64: 8, 256>}, {pipeline_mode = #tpu.pipeline_mode<synchronous>, transform_indices = @transform_2, window_bounds = array<i64: 1, 256>}, {pipeline_mode = #tpu.pipeline_mode<synchronous>, transform_indices = @transform_3, window_bounds = array<i64: 256, 128>}, {pipeline_mode = #tpu.pipeline_mode<synchronous>, transform_indices = @transform_4, window_bounds = array<i64: 1, 128>}, {pipeline_mode = #tpu.pipeline_mode<synchronous>, transform_indices = @transform_5, window_bounds = array<i64: 128, 128>}, {pipeline_mode = #tpu.pipeline_mode<synchronous>, transform_indices = @transform_6, window_bounds = array<i64: 1, 128>}, {pipeline_mode = #tpu.pipeline_mode<synchronous>, transform_indices = @transform_7, window_bounds = array<i64: 128, 8>}, {pipeline_mode = #tpu.pipeline_mode<synchronous>, transform_indices = @transform_8, window_bounds = array<i64: 1, 8>}, {transform_indices = @transform_9, window_bounds = array<i64: 8, 8>}]} {
    %c0 = arith.constant 0 : index
    %c0_0 = arith.constant 0 : index
    %0 = vector.load %arg1[%c0, %c0_0] : memref<8x8xf32, #tpu.memory_space<vmem>>, vector<8x8xf32>
    %1 = arith.truncf %0 : vector<8x8xf32> to vector<8x8xbf16>
    %c0_1 = arith.constant 0 : index
    %c0_2 = arith.constant 0 : index
    %2 = vector.load %arg2[%c0_1, %c0_2] : memref<8x256xbf16, #tpu.memory_space<vmem>>, vector<8x256xbf16>
    %cst = arith.constant dense<0.000000e+00> : vector<8x256xf32>
    %3 = tpu.matmul %1, %2, %cst {dimension_numbers = #tpu.dot_dimension_numbers<[1], [0], [0], [1], [0, 0, 1, 1], [], []>} : vector<8x8xbf16>, vector<8x256xbf16>, vector<8x256xf32> -> vector<8x256xf32>
    %c0_3 = arith.constant 0 : index
    %c0_4 = arith.constant 0 : index
    %4 = vector.load %arg3[%c0_3, %c0_4] : memref<1x256xf32, #tpu.memory_space<vmem>>, vector<1x256xf32>
    %5 = vector.broadcast %4 : vector<1x256xf32> to vector<8x256xf32>
    %6 = arith.addf %3, %5 : vector<8x256xf32>
    %cst_5 = arith.constant 0.000000e+00 : f32
    %7 = vector.broadcast %cst_5 : f32 to vector<8x256xf32>
    %8 = arith.maximumf %6, %7 : vector<8x256xf32>
    %9 = arith.truncf %8 : vector<8x256xf32> to vector<8x256xbf16>
    %c0_6 = arith.constant 0 : index
    %c0_7 = arith.constant 0 : index
    %10 = vector.load %arg4[%c0_6, %c0_7] : memref<256x128xbf16, #tpu.memory_space<vmem>>, vector<256x128xbf16>
    %cst_8 = arith.constant dense<0.000000e+00> : vector<8x128xf32>
    %11 = tpu.matmul %9, %10, %cst_8 {dimension_numbers = #tpu.dot_dimension_numbers<[1], [0], [0], [1], [0, 0, 1, 1], [], []>} : vector<8x256xbf16>, vector<256x128xbf16>, vector<8x128xf32> -> vector<8x128xf32>
    %c0_9 = arith.constant 0 : index
    %c0_10 = arith.constant 0 : index
    %12 = vector.load %arg5[%c0_9, %c0_10] : memref<1x128xf32, #tpu.memory_space<vmem>>, vector<1x128xf32>
    %13 = vector.broadcast %12 : vector<1x128xf32> to vector<8x128xf32>
    %14 = arith.addf %11, %13 : vector<8x128xf32>
    %cst_11 = arith.constant 0.000000e+00 : f32
    %15 = vector.broadcast %cst_11 : f32 to vector<8x128xf32>
    %16 = arith.maximumf %14, %15 : vector<8x128xf32>
    %17 = arith.truncf %16 : vector<8x128xf32> to vector<8x128xbf16>
    %c0_12 = arith.constant 0 : index
    %c0_13 = arith.constant 0 : index
    %18 = vector.load %arg6[%c0_12, %c0_13] : memref<128x128xbf16, #tpu.memory_space<vmem>>, vector<128x128xbf16>
    %cst_14 = arith.constant dense<0.000000e+00> : vector<8x128xf32>
    %19 = tpu.matmul %17, %18, %cst_14 {dimension_numbers = #tpu.dot_dimension_numbers<[1], [0], [0], [1], [0, 0, 1, 1], [], []>} : vector<8x128xbf16>, vector<128x128xbf16>, vector<8x128xf32> -> vector<8x128xf32>
    %c0_15 = arith.constant 0 : index
    %c0_16 = arith.constant 0 : index
    %20 = vector.load %arg7[%c0_15, %c0_16] : memref<1x128xf32, #tpu.memory_space<vmem>>, vector<1x128xf32>
    %21 = vector.broadcast %20 : vector<1x128xf32> to vector<8x128xf32>
    %22 = arith.addf %19, %21 : vector<8x128xf32>
    %cst_17 = arith.constant 0.000000e+00 : f32
    %23 = vector.broadcast %cst_17 : f32 to vector<8x128xf32>
    %24 = arith.maximumf %22, %23 : vector<8x128xf32>
    %25 = arith.truncf %24 : vector<8x128xf32> to vector<8x128xbf16>
    %c0_18 = arith.constant 0 : index
    %c0_19 = arith.constant 0 : index
    %26 = vector.load %arg8[%c0_18, %c0_19] : memref<128x8xbf16, #tpu.memory_space<vmem>>, vector<128x8xbf16>
    %cst_20 = arith.constant dense<0.000000e+00> : vector<8x8xf32>
    %27 = tpu.matmul %25, %26, %cst_20 {dimension_numbers = #tpu.dot_dimension_numbers<[1], [0], [0], [1], [0, 0, 1, 1], [], []>} : vector<8x128xbf16>, vector<128x8xbf16>, vector<8x8xf32> -> vector<8x8xf32>
    %c0_21 = arith.constant 0 : index
    %c0_22 = arith.constant 0 : index
    %28 = vector.load %arg9[%c0_21, %c0_22] : memref<1x8xf32, #tpu.memory_space<vmem>>, vector<1x8xf32>
    %29 = vector.broadcast %28 : vector<1x8xf32> to vector<8x8xf32>
    %30 = arith.addf %27, %29 : vector<8x8xf32>
    %c0_23 = arith.constant 0 : index
    %c0_24 = arith.constant 0 : index
    %31 = vector.load %arg10[%c0_23, %c0_24] : memref<8x8xf32, #tpu.memory_space<vmem>>, vector<8x8xf32>
    tpu.vector_store %arg10[%c0_23, %c0_24], %30 {strides = array<i32>} : memref<8x8xf32, #tpu.memory_space<vmem>>, vector<8x8xf32>,
    return
  }
  func.func @transform_0(%arg0: i32) -> (i32, i32) {
    %c0_i32 = arith.constant 0 : i32
    %c0_i32_0 = arith.constant 0 : i32
    return %arg0, %c0_i32 : i32, i32
  }
  func.func @transform_1(%arg0: i32) -> (i32, i32) {
    %c0_i32 = arith.constant 0 : i32
    %c0_i32_0 = arith.constant 0 : i32
    %c0_i32_1 = arith.constant 0 : i32
    return %c0_i32, %c0_i32_0 : i32, i32
  }
  func.func @transform_2(%arg0: i32) -> (i32, i32) {
    %c0_i32 = arith.constant 0 : i32
    %c0_i32_0 = arith.constant 0 : i32
    %c0_i32_1 = arith.constant 0 : i32
    return %c0_i32, %c0_i32_0 : i32, i32
  }
  func.func @transform_3(%arg0: i32) -> (i32, i32) {
    %c0_i32 = arith.constant 0 : i32
    %c0_i32_0 = arith.constant 0 : i32
    %c0_i32_1 = arith.constant 0 : i32
    return %c0_i32, %c0_i32_0 : i32, i32
  }
  func.func @transform_4(%arg0: i32) -> (i32, i32) {
    %c0_i32 = arith.constant 0 : i32
    %c0_i32_0 = arith.constant 0 : i32
    %c0_i32_1 = arith.constant 0 : i32
    return %c0_i32, %c0_i32_0 : i32, i32
  }
  func.func @transform_5(%arg0: i32) -> (i32, i32) {
    %c0_i32 = arith.constant 0 : i32
    %c0_i32_0 = arith.constant 0 : i32
    %c0_i32_1 = arith.constant 0 : i32
    return %c0_i32, %c0_i32_0 : i32, i32
  }
  func.func @transform_6(%arg0: i32) -> (i32, i32) {
    %c0_i32 = arith.constant 0 : i32
    %c0_i32_0 = arith.constant 0 : i32
    %c0_i32_1 = arith.constant 0 : i32
    return %c0_i32, %c0_i32_0 : i32, i32
  }
  func.func @transform_7(%arg0: i32) -> (i32, i32) {
    %c0_i32 = arith.constant 0 : i32
    %c0_i32_0 = arith.constant 0 : i32
    %c0_i32_1 = arith.constant 0 : i32
    return %c0_i32, %c0_i32_0 : i32, i32
  }
  func.func @transform_8(%arg0: i32) -> (i32, i32) {
    %c0_i32 = arith.constant 0 : i32
    %c0_i32_0 = arith.constant 0 : i32
    %c0_i32_1 = arith.constant 0 : i32
    return %c0_i32, %c0_i32_0 : i32, i32
  }
  func.func @transform_9(%arg0: i32) -> (i32, i32) {
    %c0_i32 = arith.constant 0 : i32
    %c0_i32_0 = arith.constant 0 : i32
    return %arg0, %c0_i32 : i32, i32
  }
}

</mosaic_0001>

<bundles_post_ra>
// kernel: tpu_custom_call.1
= control target key start
LH: loop header
LB: loop body
LE: loop exit
PB: predicated region body
PF: predicated region fallthrough
CT: control target
= control target key end

     0   :  { %14 = vsyncpa [#allocation3], 0  ;;  %s879_s0 = inlined_call_operand.hbm [shape: f32[8,8], index: 0, kind: input, shape index: {}]   ;;  %s880_s1 = inlined_call_operand.hbm [shape: bf16[8,256], index: 1, kind: input, shape index: {}]   ;;  %s881_s2 = inlined_call_operand.vmem [shape: f32[1,256], index: 2, kind: input, shape index: {}]   ;;  %s882_s3 = inlined_call_operand.hbm [shape: bf16[256,128], index: 3, kind: input, shape index: {}]   ;;  %s883_s4 = inlined_call_operand.vmem [shape: f32[1,128], index: 4, kind: input, shape index: {}]   ;;  %s884_s5 = inlined_call_operand.vmem [shape: bf16[128,128], index: 5, kind: input, shape index: {}]   ;;  %s885_s6 = inlined_call_operand.vmem [shape: f32[1,128], index: 6, kind: input, shape index: {}]   ;;  %s886_s7 = inlined_call_operand.vmem [shape: bf16[128,8], index: 7, kind: input, shape index: {}]   ;;  %s887_s8 = inlined_call_operand.vmem [shape: f32[1,8], index: 8, kind: input, shape index: {}]   ;;  %s888_s9 = inlined_call_operand.hbm [shape: f32[8,8], index: 9, kind: output, shape index: {}]  }
   0x1   :  { %15 = vsyncpa [#allocation6], 0  ;;  %s33_s11 = sshll.u32 %s880_s1, 4  ;;  %s34_s11 = int_to_ptr.hbm [resolvable:$true] %s33_s11 }
   0x2   :  { %16 = vsyncpa [#allocation4], 0  ;;  %s748_s12 = smov [#allocation5]   ;;  %s22_s16 = sshll.u32 %s879_s0, 4  ;;  %s23_s16 = int_to_ptr.hbm [resolvable:$true] %s22_s16 }
   0x3   :  { %s35_s13 = sshll.u32 %s748_s12, 4  ;;  %s749_s17 = smov [#allocation2]   ;;  %s36_s13 = int_to_ptr.vmem [resolvable:$true] %s35_s13 }
   0x4   :  { %38 = dma.hbm_to_vmem [thread:$0]  %s34_s11, 128, %s36_s13, [#allocation6]  }
   0x5   :  { %s24_s18 = sshll.u32 %s749_s17, 4  ;;  %s45_s21 = sshll.u32 %s882_s3, 4  ;;  %s25_s18 = int_to_ptr.vmem [resolvable:$true] %s24_s18  ;;  %s46_s21 = int_to_ptr.hbm [resolvable:$true] %s45_s21 }
   0x6   :  { %27 = dma.hbm_to_vmem [thread:$0]  %s23_s16, 128, %s25_s18, [#allocation3]  }
   0x7   :  { %s750_s1 = smov [#allocation7]   ;;  %s751_s23 = smov 64  }
   0x8   :  { %s47_s22 = sshll.u32 %s750_s1, 4  ;;  %s752_s24 = smov 4   ;;  %s48_s22 = int_to_ptr.vmem [resolvable:$true] %s47_s22 }
   0x9   :  { %53 = dma.hbm_to_vmem [thread:$0]  %s46_s21, 2048, %s48_s22, [#allocation6], %s751_s23, %s751_s23, %s752_s24  }
   0xa   :  { %742 = dma.done.wait [#allocation3], 128  }
   0xb   :  { %743 = vsyncadd [#allocation3], 4294967168 }
   0xc   :  { %744 = dma.done.wait [#allocation6], 2176  }
   0xd   :  { %745 = vsyncadd [#allocation6], 4294965120  ;;  %v79_v0 = vld [vmem:[#allocation5] sm:$0xff]  ;;  %vm95_vm0 = vcmask 1043456   ;;  %v77_v5 = vld [vmem:[#allocation2] sm:$0xff]  ;;  %vm91_vm1 = vcmask 64512  }
   0xe   :  { %v612_v1 = vld [vmem:[#allocation7 + $0x38] sm:$0xff]  ;;  %v87_v2 = vunpack.c.l.b16 %v79_v0  ;;  %v88_v3 = vunpack.c.h.b16 %v79_v0  ;;  %v611_v8 = vld [vmem:[#allocation7 + $0x30] sm:$0xff]  ;;  %v78_v12 = vpack.c.bf16 %v77_v5, %v77_v5  ;;  %v610_v13 = vld [vmem:[#allocation7 + $0x28] sm:$0xff]  ;;  %s753_s15 = smov [#allocation8]  }
   0xf   :  { %v620_v4 = vld [vmem:[#allocation7 + $0x78] sm:$0xff]  ;;  %264 = vmatpush.bf16.msra.mxu2 %v612_v1  ;;  %v619_v9 = vld [vmem:[#allocation7 + $0x70] sm:$0xff]  ;;  %v618_v14 = vld [vmem:[#allocation7 + $0x68] sm:$0xff] }
  0x10   :  { %v89_v6 = vpack.c.b16 %v87_v2, %v87_v2  ;;  %v90_v7 = vpack.c.b16 %v88_v3, %v88_v3  ;;  %277 = vmatpush.bf16.msra.mxu3 %v620_v4  ;;  %v609_v15 = vld [vmem:[#allocation7 + $0x20] sm:$0xff]  ;;  %v608_v17 = vld [vmem:[#allocation7 + $0x18] sm:$0xff]  ;;  %v607_v19 = vld [vmem:[#allocation7 + $0x10] sm:$0xff] }
  0x11   :  { %v617_v16 = vld [vmem:[#allocation7 + $0x60] sm:$0xff]  ;;  %v616_v18 = vld [vmem:[#allocation7 + $0x58] sm:$0xff]  ;;  %v615_v20 = vld [vmem:[#allocation7 + $0x50] sm:$0xff] }
  0x12   :  { %v97_v10 = vsel %vm95_vm0, %v89_v6, 0  ;;  %v100_v11 = vsel %vm95_vm0, %v90_v7, 0  ;;  %v606_v21 = vld [vmem:[#allocation7 + $0x8] sm:$0xff]  ;;  %v605_v23 = vld [vmem:[#allocation7] sm:$0xff]  ;;  %v626_v27 = vld [vmem:[%s884_s5 + $0x28] sm:$0xff] }
  0x13   :  { %109 = vmatpush.bf16.msra.mxu0 %v97_v10  ;;  %122 = vmatpush.bf16.msra.mxu1 %v100_v11  ;;  %v614_v22 = vld [vmem:[#allocation7 + $0x48] sm:$0xff]  ;;  %v613_v24 = vld [vmem:[#allocation7 + $0x40] sm:$0xff]  ;;  %v625_v28 = vld [vmem:[%s884_s5 + $0x20] sm:$0xff] }
  0x14   :  { %265 = vmatpush.bf16.msra.mxu2 %v611_v8  ;;  %278 = vmatpush.bf16.msra.mxu3 %v619_v9  ;;  %v628_v25 = vld [vmem:[%s884_s5 + $0x38] sm:$0xff]  ;;  %v627_v26 = vld [vmem:[%s884_s5 + $0x30] sm:$0xff]  ;;  %v80_v30 = vld [vmem:[%s881_s2] sm:$0x3]  ;;  %s462_s2 = sshll.u32 %s753_s15, 4  ;;  %s463_s2 = int_to_ptr.vmem [resolvable:$true] %s462_s2 }
  0x15   :  { %v624_v29 = vld [vmem:[%s884_s5 + $0x18] sm:$0xff]  ;;  %v623_v31 = vld [vmem:[%s884_s5 + $0x10] sm:$0xff]  ;;  %v82_v32 = vperm.slane %v80_v30, 0  ;;  %v83_v33 = vperm.slane %v80_v30, 1  ;;  %v622_v44 = vld [vmem:[%s884_s5 + $0x8] sm:$0xff] }
  0x16   :  { %475 = vmatmul.msk.bf16.vlgmr.msra.gmra.mxu0 %vm91_vm1, %v78_v12  ;;  %476 = vmatmul.msk.bf16.vlgmr.msra.gmra.mxu1 %vm91_vm1, %v78_v12  ;;  %v621_v45 = vld [vmem:[%s884_s5] sm:$0xff]  ;;  %v636_v46 = vld [vmem:[%s886_s7 + $0x38] sm:$0xff]  ;;  %v635_v47 = vld [vmem:[%s886_s7 + $0x30] sm:$0xff] }
  0x17   :  { %360 = vmatpush.bf16.msrb.mxu0 %v628_v25  ;;  %443 = vmatpush.bf16.msrb.mxu1 %v636_v46  ;;  %v634_v48 = vld [vmem:[%s886_s7 + $0x28] sm:$0xff]  ;;  %v633_v49 = vld [vmem:[%s886_s7 + $0x20] sm:$0xff]  ;;  %v632_v50 = vld [vmem:[%s886_s7 + $0x18] sm:$0xff] }
  0x18   :  { %266 = vmatpush.bf16.msra.mxu2 %v610_v13  ;;  %279 = vmatpush.bf16.msra.mxu3 %v618_v14  ;;  %v631_v51 = vld [vmem:[%s886_s7 + $0x10] sm:$0xff]  ;;  %v643_v52 = vld [vmem:[%s883_s4] ss:$0 sm:$0xff]  ;;  %v630_v61 = vld [vmem:[%s886_s7 + $0x8] sm:$0xff] }
  0x19   :  { %v629_v62 = vld [vmem:[%s886_s7] sm:$0xff]  ;;  %s464_s7 = sshll.u32 %s888_s9, 4  ;;  %s465_s7 = int_to_ptr.hbm [resolvable:$true] %s464_s7 }
  0x1a   :  { %v644_v63 = vld [vmem:[%s885_s6] ss:$0 sm:$0xff] }
  0x1b   :  { %361 = vmatpush.bf16.msrb.mxu0 %v627_v26  ;;  %444 = vmatpush.bf16.msrb.mxu1 %v635_v47  ;;  %v645_v5 = vld [vmem:[%s887_s8] ss:$0 sm:$0xff] }
  0x1c   :  { %267 = vmatpush.bf16.msra.mxu2 %v609_v15  ;;  %280 = vmatpush.bf16.msra.mxu3 %v617_v16 }
  0x1f   :  { %362 = vmatpush.bf16.msrb.mxu0 %v626_v27  ;;  %445 = vmatpush.bf16.msrb.mxu1 %v634_v48 }
  0x20   :  { %268 = vmatpush.bf16.msra.mxu2 %v608_v17  ;;  %281 = vmatpush.bf16.msra.mxu3 %v616_v18 }
  0x23   :  { %363 = vmatpush.bf16.msrb.mxu0 %v625_v28  ;;  %446 = vmatpush.bf16.msrb.mxu1 %v633_v49 }
  0x24   :  { %269 = vmatpush.bf16.msra.mxu2 %v607_v19  ;;  %282 = vmatpush.bf16.msra.mxu3 %v615_v20 }
  0x27   :  { %364 = vmatpush.bf16.msrb.mxu0 %v624_v29  ;;  %447 = vmatpush.bf16.msrb.mxu1 %v632_v50 }
  0x28   :  { %270 = vmatpush.bf16.msra.mxu2 %v606_v21  ;;  %283 = vmatpush.bf16.msra.mxu3 %v614_v22 }
  0x2b   :  { %365 = vmatpush.bf16.msrb.mxu0 %v623_v31  ;;  %448 = vmatpush.bf16.msrb.mxu1 %v631_v51 }
  0x2c   :  { %271 = vmatpush.bf16.msra.mxu2 %v605_v23  ;;  %284 = vmatpush.bf16.msra.mxu3 %v613_v24 }
  0x2f   :  { %366 = vmatpush.bf16.msrb.mxu0 %v622_v44  ;;  %449 = vmatpush.bf16.msrb.mxu1 %v630_v61 }
  0x33   :  { %367 = vmatpush.bf16.msrb.mxu0 %v621_v45  ;;  %450 = vmatpush.bf16.msrb.mxu1 %v629_v62 }
  0x93   :  { %v111_v34 = vpop.f32.mrf.mxu0  ;;  %v124_v35 = vpop.f32.mrf.mxu1 }
  0x94   :  { %v112_v36 = vadd.f32 %v111_v34, %v82_v32  ;;  %v125_v37 = vadd.f32 %v124_v35, %v83_v33 }
  0x96   :  { %v128_v38 = vmax.f32 %v112_v36, 0.0  ;;  %v129_v39 = vmax.f32 %v125_v37, 0.0 }
  0x98   :  { %v130_v40 = vpack.c.bf16 %v128_v38, %v128_v38  ;;  %v131_v41 = vpack.c.bf16 %v129_v39, %v129_v39 }
  0x9a   :  { %272 = vmatmul.bf16.vlgmr.msra.gmra.mxu2 %v130_v40  ;;  %285 = vmatmul.bf16.vlgmr.msra.gmra.mxu3 %v131_v41 }
  0x9b   :  { %v113_v42 = vpop.f32.mrf.mxu0  ;;  %v126_v43 = vpop.f32.mrf.mxu1 }
 0x11d   :  { %v273_v53 = vpop.f32.mrf.mxu2  ;;  %v286_v54 = vpop.f32.mrf.mxu3 }
 0x11e   :  { %v274_v55 = vadd.f32 %v643_v52, %v273_v53 }
 0x120   :  { %v287_v56 = vadd.f32 %v286_v54, %v274_v55 }
 0x122   :  { %v290_v57 = vmax.f32 %v287_v56, 0.0 }
 0x124   :  { %v291_v58 = vpack.c.bf16 %v290_v57, %v290_v57 }
 0x125   :  { %v275_v59 = vpop.f32.mrf.mxu2  ;;  %v288_v60 = vpop.f32.mrf.mxu3 }
 0x126   :  { %368 = vmatmul.bf16.vlgmr.msrb.gmra.mxu0 %v291_v58 }
 0x1a3   :  { %v369_v0 = vpop.f32.mrf.mxu0 }
 0x1a4   :  { %v370_v1 = vadd.f32 %v644_v63, %v369_v0 }
 0x1a6   :  { %v373_v2 = vmax.f32 %v370_v1, 0.0 }
 0x1a8   :  { %v374_v3 = vpack.c.bf16 %v373_v2, %v373_v2 }
 0x1aa   :  { %451 = vmatmul.bf16.vlgmr.msrb.gmra.mxu1 %v374_v3 }
 0x1ab   :  { %v371_v4 = vpop.f32.mrf.mxu0 }
 0x227   :  { %v452_v6 = vpop.f32.mrf.mxu1 }
 0x228   :  { %v453_v7 = vadd.f32 %v645_v5, %v452_v6 }
 0x22a   :  { %456 = vst.msk [vmem:[#allocation8] sm:$0xff] %vm91_vm1, %v453_v7 }
 0x22b   :  { %467 = dma.vmem_to_hbm [thread:$0]  %s463_s2, 128, %s465_s7, [#allocation4]  }
 0x22f   :  { %v454_v8 = vpop.f32.mrf.mxu1 }
 0x230   :  { %746 = dma.done.wait [#allocation4], 128  }
 0x231   :  { %747 = vsyncadd [#allocation4], 4294967168 }
 0x232   :  { %472 = vsyncpa [#allocation3], 1 }
 0x233   :  { %473 = vsyncpa [#allocation6], 1 }
 0x234   :  { %474 = vsyncpa [#allocation4], 1 }

</bundles_post_ra>
